<compile_context>
chip_gen: v6e
topology: v6e:2x2x1
jax: 0.10.0
libtpu: 0.0.40
codegen_flags: <defaults>
</compile_context>

<pallas_src>
import functools
import math

import jax
import jax.numpy as jnp
from jax.experimental import pallas as pl
from jax.experimental.pallas import tpu as pltpu


def _conv3x3_lrelu_kernel(xb_ref, xh_ref, m_ref, w_ref, b_ref, o_ref, *, width, thw):
    """Fused in-VMEM im2col + conv-as-matmul + bias + LeakyReLU(0.1).

    xb_ref: (1, Cin, THW)      bf16  body rows of the padded frame, flat row-major pixels
    xh_ref: (1, Cin, HB)       bf16  2 halo rows (next rows), zero-padded to HB lanes
    m_ref:  (2, THW)           bf16  column-edge masks: [0]=w!=0, [1]=w!=W-1
    w_ref:  (9, Cout, Cin)     bf16  conv weight per tap (kh*3+kw)
    b_ref:  (Cout, 1)          f32   bias
    o_ref:  (1, Cout, THW)     f32   output tile (channel-major, lane-dense pixels)
    """
    cin = xb_ref.shape[1]
    cout = o_ref.shape[1]

    xb = xb_ref[0]                                       # (Cin, THW)
    xh = xh_ref[0]                                       # (Cin, HB)
    # 128 leading zero lanes make the (kh=0, kw=0) tap (offset -1) an in-bounds slice;
    # all three pieces are multiples of 128 lanes -> aligned concat.
    zpad = jnp.zeros((cin, 128), dtype=xb.dtype)
    xt = jnp.concatenate([zpad, xb, xh], axis=1)         # (Cin, 128 + THW + HB)

    left = m_ref[0:1, :]                                 # (1, THW) zero where w == 0
    right = m_ref[1:2, :]                                # (1, THW) zero where w == W-1

    acc = jnp.zeros((cout, thw), dtype=jnp.float32)
    for kh in range(3):
        for kw in range(3):
            off = 128 + kh * width + (kw - 1)            # static lane offset of this tap
            t = xt[:, off:off + thw]                     # (Cin, THW) bf16
            if kw == 0:
                t = t * left                             # zero the left image border
            elif kw == 2:
                t = t * right                            # zero the right image border
            acc = acc + jnp.dot(w_ref[kh * 3 + kw], t,
                                preferred_element_type=jnp.float32)

    acc = acc + b_ref[...]                               # bias (lane broadcast), f32
    acc = jnp.where(acc >= 0.0, acc, 0.1 * acc)          # LeakyReLU(negative_slope=0.1)
    # TODO(synk): apply UN(out_channels) here once its definition is available.
    o_ref[0] = acc.astype(o_ref.dtype)


def residual_blocks_with_input_conv1(feat_nchw, weight_oihw, bias):
    """Forward of ResidualBlocksWithInputConv1 (conv3x3 + bias + LeakyReLU; UN=identity).

    feat_nchw:   (N, Cin, H, W)    float32
    weight_oihw: (Cout, Cin, 3, 3) float32
    bias:        (Cout,)           float32
    returns:     (N, Cout, H, W)   float32
    """
    N, Cin, H, W = feat_nchw.shape
    Cout = weight_oihw.shape[0]
    LANE = 128
    TARGET_PIX = 4096                                   # pixels per grid step (review: bigger tiles)

    # ---- row-tile selection: TH*W must be a multiple of 128 (lane-dense stores);
    #      prefer TH | H so the final reshape to NCHW is metadata-only. -------------
    th_unit = LANE // math.gcd(W, LANE)
    cover = -(-H // th_unit) * th_unit                  # rows covering H in one tile
    target_rows = max(th_unit, (TARGET_PIX // (th_unit * W)) * th_unit)
    TH = min(target_rows, cover)
    if TH < H:
        for d in range(TH, 0, -1):                      # largest divisor of H, mult of th_unit
            if d % th_unit == 0 and H % d == 0:
                TH = d
                break
    R = -(-H // TH)                                     # number of row tiles
    Hp = R * TH                                         # padded row count (>= H)
    THW = TH * W                                        # pixels per tile (multiple of 128)
    HB = ((2 * W) // LANE + 1) * LANE                   # halo lanes per tile (>= 2*W + 1)

    # ---- inputs: cast to bf16 FIRST, pad rows only (top 1, bottom Hp+1-H), flatten pixels ----
    x = feat_nchw.astype(jnp.bfloat16)
    x_rp = jnp.pad(x, ((0, 0), (0, 0), (1, Hp + 1 - H), (0, 0)))       # (N, Cin, Hp+2, W)
    x_flat = x_rp.reshape(N, Cin, (Hp + 2) * W)                        # metadata reshape

    # 2 halo rows per tile: rows (r+1)*TH and (r+1)*TH + 1 of x_rp, padded to HB lanes.
    halo_rows = [(r + 1) * TH + j for r in range(R) for j in range(2)]
    halo = jnp.take(x_rp, jnp.array(halo_rows, dtype=jnp.int32), axis=2)   # (N, Cin, 2R, W)
    halo = halo.reshape(N, Cin, R, 2 * W)
    halo = jnp.pad(halo, ((0, 0), (0, 0), (0, 0), (0, HB - 2 * W)))
    halo = halo.reshape(N, Cin, R * HB)

    # Column-edge masks in flat output-pixel coordinates (shared by every tile).
    wpos = jnp.arange(THW, dtype=jnp.int32) % W
    masks = jnp.stack([(wpos != 0).astype(jnp.bfloat16),
                       (wpos != (W - 1)).astype(jnp.bfloat16)], axis=0)    # (2, THW)

    # Weights per tap: (Cout, Cin, 3, 3) -> (3, 3, Cout, Cin) -> (9, Cout, Cin); bias as column.
    w9 = jnp.transpose(weight_oihw, (2, 3, 0, 1)).reshape(9, Cout, Cin).astype(jnp.bfloat16)
    b_col = bias.reshape(Cout, 1).astype(jnp.float32)

    kernel = functools.partial(_conv3x3_lrelu_kernel, width=W, thw=THW)

    flops = 2 * N * R * Cout * 9 * Cin * THW
    bytes_accessed = (x_flat.size * 2 + halo.size * 2 + masks.size * 2
                      + w9.size * 2 + b_col.size * 4 + N * Cout * R * THW * 4)

    out_flat = pl.pallas_call(
        kernel,
        out_shape=jax.ShapeDtypeStruct((N, Cout, R * THW), feat_nchw.dtype),
        grid_spec=pltpu.PrefetchScalarGridSpec(
            num_scalar_prefetch=0,
            grid=(N, R),
            in_specs=[
                pl.BlockSpec((1, Cin, THW), lambda n, r: (n, 0, r)),     # body rows
                pl.BlockSpec((1, Cin, HB), lambda n, r: (n, 0, r)),      # 2-row halo
                pl.BlockSpec((2, THW), lambda n, r: (0, 0)),             # edge masks (const)
                pl.BlockSpec((9, Cout, Cin), lambda n, r: (0, 0, 0)),    # weights   (const)
                pl.BlockSpec((Cout, 1), lambda n, r: (0, 0)),            # bias      (const)
            ],
            out_specs=pl.BlockSpec((1, Cout, THW), lambda n, r: (n, 0, r)),
        ),
        compiler_params=pltpu.CompilerParams(
            dimension_semantics=("parallel", "parallel"),
            vmem_limit_bytes=32 * 1024 * 1024),
        cost_estimate=pl.CostEstimate(
            flops=flops, transcendentals=0, bytes_accessed=bytes_accessed),
    )(x_flat, halo, masks, w9, b_col)

    # Channel-major flat output reshapes straight back to NCHW (metadata-only when TH | H).
    return out_flat[:, :, :H * W].reshape(N, Cout, H, W)


if __name__ == "__main__":
    key = jax.random.PRNGKey(0)
    k_x, k_w, k_b = jax.random.split(key, 3)

    N, Cin, H, W = 2, 4, 16, 16
    Cout = 64

    feat = jax.random.normal(k_x, (N, Cin, H, W), dtype=jnp.float32)
    weight = 0.1 * jax.random.normal(k_w, (Cout, Cin, 3, 3), dtype=jnp.float32)
    bias = 0.05 * jax.random.normal(k_b, (Cout,), dtype=jnp.float32)

    out = jax.jit(residual_blocks_with_input_conv1)(feat, weight, bias)
    jax.block_until_ready(out)

    # Reference: plain-JAX f32 conv + bias + LeakyReLU (kernel uses bf16 operands,
    # f32 accumulation -> bf16-appropriate tolerance).
    ref = jax.lax.conv_general_dilated(
        feat, weight, window_strides=(1, 1), padding=((1, 1), (1, 1)),
        dimension_numbers=("NCHW", "OIHW", "NCHW"),
    ) + bias.reshape(1, Cout, 1, 1)
    ref = jnp.where(ref >= 0.0, ref, 0.1 * ref)

    assert out.shape == (N, Cout, H, W)
    max_err = float(jnp.max(jnp.abs(out - ref)))
    assert jnp.allclose(out, ref, atol=3e-2, rtol=3e-2), max_err
    print("KERNEL_OK")
</pallas_src>

<mosaic_0001>
module attributes {stable_mosaic.version = 11 : i64} {
  func.func @_conv3x3_lrelu_kernel(%arg0: i32, %arg1: i32, %arg2: memref<1x4x256xbf16, #tpu.memory_space<vmem>>, %arg3: memref<1x4x128xbf16, #tpu.memory_space<vmem>>, %arg4: memref<2x256xbf16, #tpu.memory_space<vmem>>, %arg5: memref<9x64x4xbf16, #tpu.memory_space<vmem>>, %arg6: memref<64x1xf32, #tpu.memory_space<vmem>>, %arg7: memref<1x64x256xf32, #tpu.memory_space<vmem>>) attributes {dimension_semantics = [#tpu.dimension_semantics<parallel>, #tpu.dimension_semantics<parallel>], iteration_bounds = array<i64: 2, 1>, scalar_prefetch = 0 : i64, scratch_operands = 0 : i64, tpu.core_type = #tpu.core_type<tc>, window_params = [{transform_indices = @transform_0, window_bounds = array<i64: 1, 4, 256>}, {transform_indices = @transform_1, window_bounds = array<i64: 1, 4, 128>}, {pipeline_mode = #tpu.pipeline_mode<synchronous>, transform_indices = @transform_2, window_bounds = array<i64: 2, 256>}, {pipeline_mode = #tpu.pipeline_mode<synchronous>, transform_indices = @transform_3, window_bounds = array<i64: 9, 64, 4>}, {pipeline_mode = #tpu.pipeline_mode<synchronous>, transform_indices = @transform_4, window_bounds = array<i64: 64, 1>}, {transform_indices = @transform_5, window_bounds = array<i64: 1, 64, 256>}]} {
    %c0 = arith.constant 0 : index
    %c0_0 = arith.constant 0 : index
    %c0_1 = arith.constant 0 : index
    %0 = vector.load %arg2[%c0, %c0_0, %c0_1] : memref<1x4x256xbf16, #tpu.memory_space<vmem>>, vector<1x4x256xbf16>
    %1 = vector.shape_cast %0 : vector<1x4x256xbf16> to vector<4x256xbf16>
    %c0_2 = arith.constant 0 : index
    %c0_3 = arith.constant 0 : index
    %c0_4 = arith.constant 0 : index
    %2 = vector.load %arg3[%c0_2, %c0_3, %c0_4] : memref<1x4x128xbf16, #tpu.memory_space<vmem>>, vector<1x4x128xbf16>
    %3 = vector.shape_cast %2 : vector<1x4x128xbf16> to vector<4x128xbf16>
    %cst = arith.constant 0.000000e+00 : bf16
    %4 = vector.broadcast %cst : bf16 to vector<4x128xbf16>
    %5 = tpu.concatenate %4, %1, %3 in 1 : vector<4x128xbf16>, vector<4x256xbf16>, vector<4x128xbf16> -> vector<4x512xbf16>
    %c0_5 = arith.constant 0 : index
    %c0_6 = arith.constant 0 : index
    %6 = vector.load %arg4[%c0_5, %c0_6] : memref<2x256xbf16, #tpu.memory_space<vmem>>, vector<1x256xbf16>
    %c1 = arith.constant 1 : index
    %c0_7 = arith.constant 0 : index
    %7 = vector.load %arg4[%c1, %c0_7] : memref<2x256xbf16, #tpu.memory_space<vmem>>, vector<1x256xbf16>
    %cst_8 = arith.constant 0.000000e+00 : f32
    %8 = vector.broadcast %cst_8 : f32 to vector<64x256xf32>
    %9 = vector.extract_strided_slice %5 {offsets = [0, 127], sizes = [4, 256], strides = [1, 1]} : vector<4x512xbf16> to vector<4x256xbf16>
    %10 = vector.broadcast %6 : vector<1x256xbf16> to vector<4x256xbf16>
    %11 = arith.mulf %9, %10 : vector<4x256xbf16>
    %c0_9 = arith.constant 0 : index
    %c0_10 = arith.constant 0 : index
    %c0_11 = arith.constant 0 : index
    %12 = vector.load %arg5[%c0_9, %c0_10, %c0_11] : memref<9x64x4xbf16, #tpu.memory_space<vmem>>, vector<1x64x4xbf16>
    %13 = vector.shape_cast %12 : vector<1x64x4xbf16> to vector<64x4xbf16>
    %cst_12 = arith.constant dense<0.000000e+00> : vector<64x256xf32>
    %14 = tpu.matmul %13, %11, %cst_12 {dimension_numbers = #tpu.dot_dimension_numbers<[1], [0], [0], [1], [0, 0, 1, 1], [], []>} : vector<64x4xbf16>, vector<4x256xbf16>, vector<64x256xf32> -> vector<64x256xf32>
    %15 = arith.addf %8, %14 : vector<64x256xf32>
    %16 = vector.extract_strided_slice %5 {offsets = [0, 128], sizes = [4, 256], strides = [1, 1]} : vector<4x512xbf16> to vector<4x256xbf16>
    %c1_13 = arith.constant 1 : index
    %c0_14 = arith.constant 0 : index
    %c0_15 = arith.constant 0 : index
    %17 = vector.load %arg5[%c1_13, %c0_14, %c0_15] : memref<9x64x4xbf16, #tpu.memory_space<vmem>>, vector<1x64x4xbf16>
    %18 = vector.shape_cast %17 : vector<1x64x4xbf16> to vector<64x4xbf16>
    %cst_16 = arith.constant dense<0.000000e+00> : vector<64x256xf32>
    %19 = tpu.matmul %18, %16, %cst_16 {dimension_numbers = #tpu.dot_dimension_numbers<[1], [0], [0], [1], [0, 0, 1, 1], [], []>} : vector<64x4xbf16>, vector<4x256xbf16>, vector<64x256xf32> -> vector<64x256xf32>
    %20 = arith.addf %15, %19 : vector<64x256xf32>
    %21 = vector.extract_strided_slice %5 {offsets = [0, 129], sizes = [4, 256], strides = [1, 1]} : vector<4x512xbf16> to vector<4x256xbf16>
    %22 = vector.broadcast %7 : vector<1x256xbf16> to vector<4x256xbf16>
    %23 = arith.mulf %21, %22 : vector<4x256xbf16>
    %c2 = arith.constant 2 : index
    %c0_17 = arith.constant 0 : index
    %c0_18 = arith.constant 0 : index
    %24 = vector.load %arg5[%c2, %c0_17, %c0_18] : memref<9x64x4xbf16, #tpu.memory_space<vmem>>, vector<1x64x4xbf16>
    %25 = vector.shape_cast %24 : vector<1x64x4xbf16> to vector<64x4xbf16>
    %cst_19 = arith.constant dense<0.000000e+00> : vector<64x256xf32>
    %26 = tpu.matmul %25, %23, %cst_19 {dimension_numbers = #tpu.dot_dimension_numbers<[1], [0], [0], [1], [0, 0, 1, 1], [], []>} : vector<64x4xbf16>, vector<4x256xbf16>, vector<64x256xf32> -> vector<64x256xf32>
    %27 = arith.addf %20, %26 : vector<64x256xf32>
    %28 = vector.extract_strided_slice %5 {offsets = [0, 143], sizes = [4, 256], strides = [1, 1]} : vector<4x512xbf16> to vector<4x256xbf16>
    %29 = vector.broadcast %6 : vector<1x256xbf16> to vector<4x256xbf16>
    %30 = arith.mulf %28, %29 : vector<4x256xbf16>
    %c3 = arith.constant 3 : index
    %c0_20 = arith.constant 0 : index
    %c0_21 = arith.constant 0 : index
    %31 = vector.load %arg5[%c3, %c0_20, %c0_21] : memref<9x64x4xbf16, #tpu.memory_space<vmem>>, vector<1x64x4xbf16>
    %32 = vector.shape_cast %31 : vector<1x64x4xbf16> to vector<64x4xbf16>
    %cst_22 = arith.constant dense<0.000000e+00> : vector<64x256xf32>
    %33 = tpu.matmul %32, %30, %cst_22 {dimension_numbers = #tpu.dot_dimension_numbers<[1], [0], [0], [1], [0, 0, 1, 1], [], []>} : vector<64x4xbf16>, vector<4x256xbf16>, vector<64x256xf32> -> vector<64x256xf32>
    %34 = arith.addf %27, %33 : vector<64x256xf32>
    %35 = vector.extract_strided_slice %5 {offsets = [0, 144], sizes = [4, 256], strides = [1, 1]} : vector<4x512xbf16> to vector<4x256xbf16>
    %c4 = arith.constant 4 : index
    %c0_23 = arith.constant 0 : index
    %c0_24 = arith.constant 0 : index
    %36 = vector.load %arg5[%c4, %c0_23, %c0_24] : memref<9x64x4xbf16, #tpu.memory_space<vmem>>, vector<1x64x4xbf16>
    %37 = vector.shape_cast %36 : vector<1x64x4xbf16> to vector<64x4xbf16>
    %cst_25 = arith.constant dense<0.000000e+00> : vector<64x256xf32>
    %38 = tpu.matmul %37, %35, %cst_25 {dimension_numbers = #tpu.dot_dimension_numbers<[1], [0], [0], [1], [0, 0, 1, 1], [], []>} : vector<64x4xbf16>, vector<4x256xbf16>, vector<64x256xf32> -> vector<64x256xf32>
    %39 = arith.addf %34, %38 : vector<64x256xf32>
    %40 = vector.extract_strided_slice %5 {offsets = [0, 145], sizes = [4, 256], strides = [1, 1]} : vector<4x512xbf16> to vector<4x256xbf16>
    %41 = vector.broadcast %7 : vector<1x256xbf16> to vector<4x256xbf16>
    %42 = arith.mulf %40, %41 : vector<4x256xbf16>
    %c5 = arith.constant 5 : index
    %c0_26 = arith.constant 0 : index
    %c0_27 = arith.constant 0 : index
    %43 = vector.load %arg5[%c5, %c0_26, %c0_27] : memref<9x64x4xbf16, #tpu.memory_space<vmem>>, vector<1x64x4xbf16>
    %44 = vector.shape_cast %43 : vector<1x64x4xbf16> to vector<64x4xbf16>
    %cst_28 = arith.constant dense<0.000000e+00> : vector<64x256xf32>
    %45 = tpu.matmul %44, %42, %cst_28 {dimension_numbers = #tpu.dot_dimension_numbers<[1], [0], [0], [1], [0, 0, 1, 1], [], []>} : vector<64x4xbf16>, vector<4x256xbf16>, vector<64x256xf32> -> vector<64x256xf32>
    %46 = arith.addf %39, %45 : vector<64x256xf32>
    %47 = vector.extract_strided_slice %5 {offsets = [0, 159], sizes = [4, 256], strides = [1, 1]} : vector<4x512xbf16> to vector<4x256xbf16>
    %48 = vector.broadcast %6 : vector<1x256xbf16> to vector<4x256xbf16>
    %49 = arith.mulf %47, %48 : vector<4x256xbf16>
    %c6 = arith.constant 6 : index
    %c0_29 = arith.constant 0 : index
    %c0_30 = arith.constant 0 : index
    %50 = vector.load %arg5[%c6, %c0_29, %c0_30] : memref<9x64x4xbf16, #tpu.memory_space<vmem>>, vector<1x64x4xbf16>
    %51 = vector.shape_cast %50 : vector<1x64x4xbf16> to vector<64x4xbf16>
    %cst_31 = arith.constant dense<0.000000e+00> : vector<64x256xf32>
    %52 = tpu.matmul %51, %49, %cst_31 {dimension_numbers = #tpu.dot_dimension_numbers<[1], [0], [0], [1], [0, 0, 1, 1], [], []>} : vector<64x4xbf16>, vector<4x256xbf16>, vector<64x256xf32> -> vector<64x256xf32>
    %53 = arith.addf %46, %52 : vector<64x256xf32>
    %54 = vector.extract_strided_slice %5 {offsets = [0, 160], sizes = [4, 256], strides = [1, 1]} : vector<4x512xbf16> to vector<4x256xbf16>
    %c7 = arith.constant 7 : index
    %c0_32 = arith.constant 0 : index
    %c0_33 = arith.constant 0 : index
    %55 = vector.load %arg5[%c7, %c0_32, %c0_33] : memref<9x64x4xbf16, #tpu.memory_space<vmem>>, vector<1x64x4xbf16>
    %56 = vector.shape_cast %55 : vector<1x64x4xbf16> to vector<64x4xbf16>
    %cst_34 = arith.constant dense<0.000000e+00> : vector<64x256xf32>
    %57 = tpu.matmul %56, %54, %cst_34 {dimension_numbers = #tpu.dot_dimension_numbers<[1], [0], [0], [1], [0, 0, 1, 1], [], []>} : vector<64x4xbf16>, vector<4x256xbf16>, vector<64x256xf32> -> vector<64x256xf32>
    %58 = arith.addf %53, %57 : vector<64x256xf32>
    %59 = vector.extract_strided_slice %5 {offsets = [0, 161], sizes = [4, 256], strides = [1, 1]} : vector<4x512xbf16> to vector<4x256xbf16>
    %60 = vector.broadcast %7 : vector<1x256xbf16> to vector<4x256xbf16>
    %61 = arith.mulf %59, %60 : vector<4x256xbf16>
    %c8 = arith.constant 8 : index
    %c0_35 = arith.constant 0 : index
    %c0_36 = arith.constant 0 : index
    %62 = vector.load %arg5[%c8, %c0_35, %c0_36] : memref<9x64x4xbf16, #tpu.memory_space<vmem>>, vector<1x64x4xbf16>
    %63 = vector.shape_cast %62 : vector<1x64x4xbf16> to vector<64x4xbf16>
    %cst_37 = arith.constant dense<0.000000e+00> : vector<64x256xf32>
    %64 = tpu.matmul %63, %61, %cst_37 {dimension_numbers = #tpu.dot_dimension_numbers<[1], [0], [0], [1], [0, 0, 1, 1], [], []>} : vector<64x4xbf16>, vector<4x256xbf16>, vector<64x256xf32> -> vector<64x256xf32>
    %65 = arith.addf %58, %64 : vector<64x256xf32>
    %c0_38 = arith.constant 0 : index
    %c0_39 = arith.constant 0 : index
    %66 = vector.load %arg6[%c0_38, %c0_39] : memref<64x1xf32, #tpu.memory_space<vmem>>, vector<64x1xf32>
    %67 = vector.broadcast %66 : vector<64x1xf32> to vector<64x256xf32>
    %68 = arith.addf %65, %67 : vector<64x256xf32>
    %cst_40 = arith.constant 0.000000e+00 : f32
    %69 = vector.broadcast %cst_40 : f32 to vector<64x256xf32>
    %70 = arith.cmpf oge, %68, %69 : vector<64x256xf32>
    %cst_41 = arith.constant 1.000000e-01 : f32
    %71 = vector.broadcast %cst_41 : f32 to vector<64x256xf32>
    %72 = arith.mulf %71, %68 : vector<64x256xf32>
    %73 = arith.select %70, %68, %72 : vector<64x256xi1>, vector<64x256xf32>
    %c0_42 = arith.constant 0 : index
    %c0_43 = arith.constant 0 : index
    %c0_44 = arith.constant 0 : index
    %74 = vector.load %arg7[%c0_42, %c0_43, %c0_44] : memref<1x64x256xf32, #tpu.memory_space<vmem>>, vector<1x64x256xf32>
    %75 = vector.shape_cast %74 : vector<1x64x256xf32> to vector<64x256xf32>
    %76 = vector.shape_cast %73 : vector<64x256xf32> to vector<1x64x256xf32>
    tpu.vector_store %arg7[%c0_42, %c0_43, %c0_44], %76 {strides = array<i32>} : memref<1x64x256xf32, #tpu.memory_space<vmem>>, vector<1x64x256xf32>,
    return
  }
  func.func @transform_0(%arg0: i32, %arg1: i32) -> (i32, i32, i32) {
    %c0_i32 = arith.constant 0 : i32
    %c0_i32_0 = arith.constant 0 : i32
    return %arg0, %c0_i32, %arg1 : i32, i32, i32
  }
  func.func @transform_1(%arg0: i32, %arg1: i32) -> (i32, i32, i32) {
    %c0_i32 = arith.constant 0 : i32
    %c0_i32_0 = arith.constant 0 : i32
    return %arg0, %c0_i32, %arg1 : i32, i32, i32
  }
  func.func @transform_2(%arg0: i32, %arg1: i32) -> (i32, i32) {
    %c0_i32 = arith.constant 0 : i32
    %c0_i32_0 = arith.constant 0 : i32
    %c0_i32_1 = arith.constant 0 : i32
    return %c0_i32, %c0_i32_0 : i32, i32
  }
  func.func @transform_3(%arg0: i32, %arg1: i32) -> (i32, i32, i32) {
    %c0_i32 = arith.constant 0 : i32
    %c0_i32_0 = arith.constant 0 : i32
    %c0_i32_1 = arith.constant 0 : i32
    %c0_i32_2 = arith.constant 0 : i32
    return %c0_i32, %c0_i32_0, %c0_i32_1 : i32, i32, i32
  }
  func.func @transform_4(%arg0: i32, %arg1: i32) -> (i32, i32) {
    %c0_i32 = arith.constant 0 : i32
    %c0_i32_0 = arith.constant 0 : i32
    %c0_i32_1 = arith.constant 0 : i32
    return %c0_i32, %c0_i32_0 : i32, i32
  }
  func.func @transform_5(%arg0: i32, %arg1: i32) -> (i32, i32, i32) {
    %c0_i32 = arith.constant 0 : i32
    %c0_i32_0 = arith.constant 0 : i32
    return %arg0, %c0_i32, %arg1 : i32, i32, i32
  }
}

</mosaic_0001>

<bundles_post_ra>
// kernel: residual_blocks_with_input_conv1.1
= control target key start
LH: loop header
LB: loop body
LE: loop exit
PB: predicated region body
PF: predicated region fallthrough
CT: control target
= control target key end

     0   :  { %s2272_s18 = smov 0   ;;  %s2274_s19 = smov 0   ;;  %s2878_s0 = inlined_call_operand.vmem [shape: bf16[2,4,288], index: 0, kind: input, shape index: {}]   ;;  %s2879_s1 = inlined_call_operand.vmem [shape: bf16[2,4,128], index: 1, kind: input, shape index: {}]   ;;  %s2880_s2 = inlined_call_operand.vmem [shape: bf16[2,256], index: 2, kind: input, shape index: {}]   ;;  %s2881_s3 = inlined_call_operand.vmem [shape: bf16[9,64,4], index: 3, kind: input, shape index: {}]   ;;  %s2882_s4 = inlined_call_operand.vmem [shape: f32[64,1], index: 4, kind: input, shape index: {}]   ;;  %s2883_s5 = inlined_call_operand.vmem [shape: f32[2,64,256], index: 5, kind: output, shape index: {}]  }
   0x1   :  { %s2276_s20 = smov 0  }
   0x2 LB: > { %s27_s21 = sadd.s32 1, %s2222_s19  ;;  %p1970_p0 = scmp.ge.s32.totalorder %s2226_s20, 1  ;;  %s2226_s20 = sphi %s2276_s20, %s15_s20   ;;  %s2222_s19 = sphi %s2274_s19, %s2925_s19   ;;  %s2218_s18 = sphi %s2272_s18, %s2924_s18  }
   0x3   : > { %p29_p1 = scmp.ge.s32.totalorder %s27_s21, 2  ;;  %p230_p2 = scmp.lt.s32.totalorder %s2226_s20, 3 }
   0x5   : > { %s2927_s21 = smov (%p29_p1, %s27_s21), 0  ;;  %p231_p3 = pnand %p1970_p0, %p230_p2 }
   0x7   : > { %234 = sbr.rel (%p231_p3) target bundleno = 662 (0x296), region = 40 }
   0xc   : > { %v1976_v0 = vld.sshfl [vmem:[%s2880_s2] sm:$0x11 pattern:$0x75316420]  ;;  %v339_v1 = vlaneseq  ;;  %v2228_v2 = vmov 1966171168  }
   0xd   : > { %v337_v3 = vunpack.c.l.s4 %v2228_v2  ;;  %v335_v6 = vcombine.high %v1976_v0, %v1976_v0  ;;  %s2229_s24 = smov 127   ;;  %s2230_s25 = smov 1   ;;  %vm428_vm0 = vcmask 1041408   ;;  %v2168_v24 = vld [vmem:[%s2881_s3 + $0x30] sm:$0xff]   ;;  %v2233_v25 = vmov 0   ;;  %v2169_v26 = vld [vmem:[%s2881_s3 + $0x20] sm:$0xff]  }
   0xe   : > { %v340_v4 = vshrl.u32 %v339_v1, 7  ;;  %s2231_s26 = smov 15   ;;  %s2232_s27 = smov 17   ;;  %487 = vmatprep.mubr.bf16.mxu1 %v2233_v25  ;;  %vm415_vm1 = vcmask 31744   ;;  %467 = vmatprep.mubr.bf16.mxu0 %v2233_v25  ;;  %v2170_v27 = vld [vmem:[%s2881_s3 + $0x38] sm:$0xff]   ;;  %v2171_v28 = vld [vmem:[%s2881_s3 + $0x28] sm:$0xff]  }
   0xf   : > { %v338_v5 = vunpack.c.0.s8 %v337_v3  ;;  %p282_p4 = scmp.lt.s32.totalorder %s2218_s18, 1  ;;  %2166 = vset.pattern.permute.xlu0 %v2233_v25  ;;  %2167 = vset.pattern.permute.xlu1 %v2233_v25  ;;  %vm370_vm2 = vcmask 1039360   ;;  %vm537_vm3 = vcmask 7168   ;;  %vm809_vm4 = vcmask 121856   ;;  %s2234_s23 = smov 31   ;;  %v2172_v58 = vld [vmem:[%s2881_s3] sm:$0xff]  }
  0x10   : > { %v355_v9 = vsub.s32 0, %v340_v4  ;;  %vm1115_vm5 = vcmask 138240   ;;  %s2239_s30 = smov 97   ;;  %vm1275_vm6 = vcmask 252928   ;;  %vm855_vm7 = vcmask 924672   ;;  %s2240_s14 = smov 96  }
  0x11   : > { %v341_v7 = vsub.s32 %v338_v5, %v340_v4  ;;  %s2929_s18 = smov (!%p282_p4, %s2218_s18), 1  ;;  %v2173_v4 = vld [vmem:[%s2881_s3 + $0x40] sm:$0xff]   ;;  %vm1001_vm8 = vcmask 916480   ;;  %vm1580_vm9 = vcmask 269312   ;;  %vm1161_vm10 = vcmask 908288  }
  0x12   : > { %s2127_s28 = smul.u32 6, %s2929_s18  ;;  %s1972_s15 = sshll.u32 %s2929_s18, 1  ;;  %vm1321_vm11 = vcmask 793600   ;;  %vm1466_vm12 = vcmask 785408   ;;  %vm1626_vm13 = vcmask 777216  }
  0x13   : > { %v342_v8 = vrot.slane %v1976_v0, %v341_v7  ;;  %v349_v10 = vrot.slane %v335_v6, %v341_v7  ;;  %s301_s22 = scalar_lea.vmem %s2879_s1, %s1972_s15  ;;  %v2174_v6 = vld [vmem:[%s2881_s3 + $0x8] sm:$0xff]   ;;  %s2241_s15 = smov 95  }
  0x14   : > { %s289_s6 = scalar_lea.vmem %s2878_s0, %s2127_s28  ;;  %v2372_v40 = vld [vmem:[%s301_s22] sm:$0x3] }
  0x15   : > { %v351_v11 = vpack.i.b16 %v342_v8, %v342_v8  ;;  %v631_v12 = vshrl.u32 %v342_v8, 16  ;;  %v358_v13 = vpack.i.b16 %v349_v10, %v349_v10  ;;  %v638_v14 = vshrl.u32 %v349_v10, 16  ;;  %v2323_v21 = vld.sshfl [vmem:[%s289_s6] sm:$0x33 pattern:$0x76325410] }
  0x16   : > { %v2327_v22 = vcombine.high %v2323_v21, %v2323_v21  ;;  %v430_v23 = vsel %vm428_vm0, %v2323_v21, 0 }
  0x17   : > { %v2295_v15 = vrot.slane %v351_v11, %v355_v9  ;;  %v632_v16 = vpack.i.b16 %v631_v12, %v631_v12  ;;  %v639_v17 = vpack.i.b16 %v638_v14, %v638_v14  ;;  %v2301_v19 = vrot.slane %v358_v13, %v355_v9 }
  0x18   : > { %2125 = vmatprep.subr.msk.bf16.mxu1 %vm428_vm0, %v2327_v22  ;;  %1989 = vmatprep.subr.msk.bf16.mxu0 %vm428_vm0, %v2327_v22 }
  0x19   : > { %366 = vrot.lane.b32.xlu0 %v2295_v15, %s2229_s24  ;;  %v2299_v18 = vrot.slane %v632_v16, %v355_v9  ;;  %v2305_v20 = vrot.slane %v639_v17, %v355_v9  ;;  %2126 = vmatpush1.bf16.msra.mxu1 %v430_v23  ;;  %v2175_v17 = vld [vmem:[%s2881_s3 + $0x48] sm:$0xff]  }
  0x1a   : > { %450 = vmatpush1.bf16.msra.mxu0 %v430_v23 }
  0x1b   : > { %647 = vrot.lane.b32.xlu1 %v2299_v18, %s2230_s25 }
  0x1c   : > { %1992 = vmatmul.mubr.msk.bf16.vlgmr.msra.gmra.mxu1 %vm415_vm1, %v2168_v24 }
  0x1d   : > { %368 = vrot.lane.b32.xlu0 %v2301_v19, %s2229_s24  ;;  %497 = vmatprep.mubr.bf16.mxu1 %v2233_v25 }
  0x1e   : > { %1990 = vmatmul.mubr.msk.bf16.vlgmr.msra.gmra.mxu0 %vm415_vm1, %v2169_v26 }
  0x1f   : > { %649 = vrot.lane.b32.xlu1 %v2305_v20, %s2230_s25  ;;  %477 = vmatprep.mubr.bf16.mxu0 %v2233_v25 }
  0x21   : > { %805 = vrot.lane.b32.xlu0 %v2295_v15, %s2231_s26 }
  0x23   : > { %807 = vrot.lane.b32.xlu1 %v2301_v19, %s2231_s26  ;;  %s2236_s26 = smov 112  }
  0x24   : > { %1993 = vmatmul.mubr.msk.bf16.gmra.mxu1 %vm415_vm1, %v2170_v27 }
  0x25   : > { %1111 = vrot.lane.b32.xlu0 %v2299_v18, %s2232_s27  ;;  %590 = vmatprep.mubr.bf16.mxu1 %v2233_v25 }
  0x26   : > { %1991 = vmatmul.mubr.msk.bf16.gmra.mxu0 %vm415_vm1, %v2171_v28 }
  0x27   : > { %1113 = vrot.lane.b32.xlu1 %v2305_v20, %s2232_s27  ;;  %748 = vmatprep.mubr.bf16.mxu0 %v2233_v25  ;;  %s2237_s27 = smov 33  }
  0x8b   : > { %v367_v29 = vpop.permute.xlu0 %366 }
  0x8c   : > { %v375_v30 = vmul.bf16 0, %v367_v29 }
  0x8d   : > { %v648_v31 = vpop.permute.xlu1 %647 }
  0x8e   : > { %531 = vrot.lane.b32.xlu0 %v375_v30, %s2230_s25  ;;  %v655_v39 = vmul.bf16 %v2323_v21, %v648_v31  ;;  %v2177_v30 = vld [vmem:[%s2881_s3 + $0x50] sm:$0xff]  }
  0x8f   : > { %v369_v32 = vpop.permute.xlu0 %368 }
  0x90   : > { %v371_v33 = vsel %vm370_vm2, %v367_v29, %v369_v32  ;;  %v377_v34 = vmul.bf16 %v369_v32, %v2327_v22 }
  0x91   : > { %v376_v35 = vmul.bf16 %v2323_v21, %v371_v33  ;;  %v650_v36 = vpop.permute.xlu1 %649 }
  0x92   : > { %v651_v37 = vsel %vm537_vm3, %v648_v31, %v650_v36  ;;  %535 = vrot.lane.b32.xlu0 %v377_v34, %s2230_s25  ;;  %v657_v42 = vmul.bf16 %v650_v36, %v2372_v40  ;;  %v2180_v36 = vld [vmem:[%s2881_s3 + $0x60] sm:$0xff]  }
  0x93   : > { %v656_v38 = vmul.bf16 %v651_v37, %v2327_v22  ;;  %533 = vrot.lane.b32.xlu1 %v376_v35, %s2230_s25  ;;  %v806_v41 = vpop.permute.xlu0 %805  ;;  %s2235_s25 = smov 113   ;;  %v2179_v35 = vld [vmem:[%s2881_s3 + $0x58] sm:$0xff]   ;;  %v2182_v37 = vld [vmem:[%s2881_s3 + $0x68] sm:$0xff]  }
  0x94   : > { %v814_v44 = vmul.bf16 %v2323_v21, %v806_v41 }
  0x95   : > { %v808_v43 = vpop.permute.xlu1 %807 }
  0x96   : > { %692 = vrot.lane.b32.xlu0 %v656_v38, %s2229_s24  ;;  %v810_v45 = vsel %vm809_vm4, %v806_v41, %v808_v43  ;;  %v816_v46 = vmul.bf16 %v808_v43, %v2372_v40  ;;  %v2183_v38 = vld [vmem:[%s2881_s3 + $0x88] sm:$0xff]   ;;  %v2186_v41 = vld [vmem:[%s2881_s3 + $0x78] sm:$0xff]   ;;  %v1736_v43 = vld [vmem:[%s2882_s4] sm:$0xff] }
  0x97   : > { %690 = vrot.lane.b32.xlu1 %v655_v39, %s2229_s24  ;;  %v815_v47 = vmul.bf16 %v810_v45, %v2327_v22  ;;  %v1112_v48 = vpop.permute.xlu0 %1111  ;;  %v2184_v39 = vld [vmem:[%s2881_s3 + $0x70] sm:$0xff]  }
  0x98   : > { %v1120_v49 = vmul.bf16 %v2323_v21, %v1112_v48  ;;  %v1738_v45 = vld [vmem:[%s2882_s4 + $0x10] sm:$0xff] }
  0x99   : > { %v1114_v50 = vpop.permute.xlu1 %1113 }
  0x9a   : > { %1271 = vrot.lane.b32.xlu0 %v2295_v15, %s2234_s23  ;;  %v1122_v51 = vmul.bf16 %v1114_v50, %v2372_v40  ;;  %v1116_v1 = vsel %vm1115_vm5, %v1112_v48, %v1114_v50  ;;  %v1741_v48 = vld [vmem:[%s2882_s4 + $0x28] sm:$0xff]  ;;  %v1743_v50 = vld [vmem:[%s2882_s4 + $0x38] sm:$0xff] }
  0x9b   : > { %694 = vrot.lane.b32.xlu1 %v657_v42, %s2229_s24  ;;  %s2238_s24 = smov 111   ;;  %v1121_v7 = vmul.bf16 %v1116_v1, %v2327_v22  ;;  %v2187_v42 = vld [vmem:[%s2881_s3 + $0x98] sm:$0xff]  }
  0x9e   : > { %849 = vrot.lane.b32.xlu0 %v814_v44, %s2235_s25  ;;  %v1737_v44 = vld [vmem:[%s2882_s4 + $0x8] sm:$0xff] }
  0x9f   : > { %1273 = vrot.lane.b32.xlu1 %v2301_v19, %s2234_s23  ;;  %v2176_v19 = vld [vmem:[%s2881_s3 + $0x10] sm:$0xff]  }
  0xa2   : > { %853 = vrot.lane.b32.xlu0 %v816_v46, %s2235_s25  ;;  %v1739_v46 = vld [vmem:[%s2882_s4 + $0x18] sm:$0xff] }
  0xa3   : > { %851 = vrot.lane.b32.xlu1 %v815_v47, %s2235_s25  ;;  %v1740_v47 = vld [vmem:[%s2882_s4 + $0x20] sm:$0xff] }
  0xa6   : > { %997 = vrot.lane.b32.xlu0 %v2327_v22, %s2236_s26 }
  0xa7   : > { %995 = vrot.lane.b32.xlu1 %v2323_v21, %s2236_s26 }
  0xaa   : > { %1576 = vrot.lane.b32.xlu0 %v2299_v18, %s2237_s27 }
  0xab   : > { %999 = vrot.lane.b32.xlu1 %v2372_v40, %s2236_s26 }
  0xae   : > { %1155 = vrot.lane.b32.xlu0 %v1120_v49, %s2238_s24  ;;  %v1742_v49 = vld [vmem:[%s2882_s4 + $0x30] sm:$0xff] }
  0xaf   : > { %1578 = vrot.lane.b32.xlu1 %v2305_v20, %s2237_s27 }
  0xb2   : > { %1159 = vrot.lane.b32.xlu0 %v1122_v51, %s2238_s24 }
 0x100   : > { %v532_v52 = vpop.permute.xlu0 %531 }
 0x104   : > { %v536_v53 = vpop.permute.xlu0 %535 }
 0x105   : > { %v534_v54 = vpop.permute.xlu1 %533 }
 0x106   : > { %v538_v55 = vsel %vm537_vm3, %v532_v52, %v534_v54  ;;  %v539_v56 = vsel %vm537_vm3, %v534_v54, %v536_v53 }
 0x107   : > { %v553_v57 = vsel %vm428_vm0, %v538_v55, 0  ;;  %1998 = vmatprep.subr.msk.bf16.mxu1 %vm428_vm0, %v539_v56 }
 0x108   : > { %573 = vmatpush1.bf16.msra.mxu1 %v553_v57  ;;  %v693_v59 = vpop.permute.xlu0 %692 }
 0x109   : > { %v691_v60 = vpop.permute.xlu1 %690 }
 0x10a   : > { %v696_v61 = vsel %vm370_vm2, %v691_v60, %v693_v59 }
 0x10b   : > { %1999 = vmatmul.mubr.msk.bf16.vlgmr.msra.gmra.mxu1 %vm415_vm1, %v2172_v58  ;;  %v711_v3 = vsel %vm428_vm0, %v696_v61, 0 }
 0x10c   : > { %v1272_v62 = vpop.permute.xlu0 %1271  ;;  %600 = vmatprep.mubr.bf16.mxu1 %v2233_v25 }
 0x10d   : > { %v1280_v63 = vmul.bf16 %v2323_v21, %v1272_v62  ;;  %v695_v0 = vpop.permute.xlu1 %694 }
 0x10e   : > { %v697_v2 = vsel %vm370_vm2, %v693_v59, %v695_v0  ;;  %v2188_v59 = vld [vmem:[%s2881_s3 + $0xa0] sm:$0xff]  }
 0x10f   : > { %2015 = vmatprep.subr.msk.bf16.mxu0 %vm428_vm0, %v697_v2  ;;  %1315 = vrot.lane.b32.xlu1 %v1280_v63, %s2239_s30  ;;  %v2189_v0 = vld [vmem:[%s2881_s3 + $0xc0] sm:$0xff]  }
 0x110   : > { %731 = vmatpush1.bf16.msra.mxu0 %v711_v3  ;;  %v850_v5 = vpop.permute.xlu0 %849 }
 0x111   : > { %v1274_v8 = vpop.permute.xlu1 %1273 }
 0x112   : > { %v1276_v9 = vsel %vm1275_vm6, %v1272_v62, %v1274_v8  ;;  %v1282_v11 = vmul.bf16 %v1274_v8, %v2372_v40 }
 0x113   : > { %v1281_v10 = vmul.bf16 %v1276_v9, %v2327_v22  ;;  %1157 = vrot.lane.b32.xlu1 %v1121_v7, %s2238_s24  ;;  %2016 = vmatmul.mubr.msk.bf16.vlgmr.msra.gmra.mxu0 %vm415_vm1, %v2173_v4  ;;  %v2190_v4 = vld [vmem:[%s2881_s3 + $0xa8] sm:$0xff]   ;;  %s2124_s24 = sshll.u32 %s2929_s18, 7 }
 0x114   : > { %v854_v12 = vpop.permute.xlu0 %853  ;;  %2000 = vmatmul.mubr.msk.bf16.gmra.mxu1 %vm415_vm1, %v2174_v6  ;;  %758 = vmatprep.mubr.bf16.mxu0 %v2233_v25  ;;  %v2191_v9 = vld [vmem:[%s2881_s3 + $0xc8] sm:$0xff]   ;;  %s2823_s29 = scalar_lea.vmem %s2883_s5, %s2124_s24 }
 0x115   : > { %1317 = vrot.lane.b32.xlu0 %v1281_v10, %s2239_s30  ;;  %v852_v13 = vpop.permute.xlu1 %851  ;;  %610 = vmatprep.mubr.bf16.mxu1 %v2233_v25 }
 0x116   : > { %v856_v14 = vsel %vm855_vm7, %v850_v5, %v852_v13  ;;  %v857_v15 = vsel %vm855_vm7, %v852_v13, %v854_v12 }
 0x117   : > { %1319 = vrot.lane.b32.xlu1 %v1282_v11, %s2239_s30  ;;  %v871_v16 = vsel %vm428_vm0, %v856_v14, 0  ;;  %2032 = vmatprep.subr.msk.bf16.mxu1 %vm428_vm0, %v857_v15  ;;  %v2192_v11 = vld [vmem:[%s2881_s3 + $0xb0] sm:$0xff]  }
 0x118   : > { %891 = vmatpush1.bf16.msra.mxu1 %v871_v16  ;;  %v998_v18 = vpop.permute.xlu0 %997  ;;  %v2193_v16 = vld [vmem:[%s2881_s3 + $0xd0] sm:$0xff]  }
 0x119   : > { %v996_v20 = vpop.permute.xlu1 %995  ;;  %1460 = vrot.lane.b32.xlu0 %v2323_v21, %s2240_s14 }
 0x11a   : > { %v1002_v23 = vsel %vm1001_vm8, %v996_v20, %v998_v18  ;;  %v2197_v20 = vld [vmem:[%s2881_s3 + $0x100] sm:$0xff]  }
 0x11b   : > { %1462 = vrot.lane.b32.xlu1 %v2327_v22, %s2240_s14  ;;  %2017 = vmatmul.mubr.msk.bf16.gmra.mxu0 %vm415_vm1, %v2175_v17  ;;  %v1017_v26 = vsel %vm428_vm0, %v1002_v23, 0  ;;  %v2194_v17 = vld [vmem:[%s2881_s3 + $0xb8] sm:$0xff]   ;;  %v2576_v23 = vpop.f32.mrf.mxu1 }
 0x11c   : > { %v1577_v24 = vpop.permute.xlu0 %1576  ;;  %2001 = vmatmul.mubr.msk.bf16.gmra.mxu1 %vm415_vm1, %v2176_v19  ;;  %768 = vmatprep.mubr.bf16.mxu0 %v2233_v25  ;;  %v2196_v19 = vld [vmem:[%s2881_s3 + $0xe0] sm:$0xff]  }
 0x11d   : > { %v1000_v27 = vpop.permute.xlu1 %999  ;;  %v1585_v28 = vmul.bf16 %v2323_v21, %v1577_v24  ;;  %1464 = vrot.lane.b32.xlu0 %v2372_v40, %s2240_s14  ;;  %620 = vmatprep.mubr.bf16.mxu1 %v2233_v25  ;;  %v2178_v21 = vld [vmem:[%s2881_s3 + $0x18] sm:$0xff]  }
 0x11e   : > { %v1003_v29 = vsel %vm1001_vm8, %v998_v18, %v1000_v27  ;;  %v2195_v18 = vld [vmem:[%s2881_s3 + $0xd8] sm:$0xff]   ;;  %v2199_v27 = vld [vmem:[%s2881_s3 + $0x108] sm:$0xff]  }
 0x11f   : > { %2049 = vmatprep.subr.msk.bf16.mxu0 %vm428_vm0, %v1003_v29  ;;  %1620 = vrot.lane.b32.xlu1 %v1585_v28, %s2241_s15  ;;  %v469_v28 = vpop.f32.mrf.mxu0 }
 0x120   : > { %1037 = vmatpush1.bf16.msra.mxu0 %v1017_v26  ;;  %v1156_v51 = vpop.permute.xlu0 %1155  ;;  %v2583_v26 = vpop.f32.mrf.mxu1 }
 0x121   : > { %v1579_v31 = vpop.permute.xlu1 %1578 }
 0x122   : > { %v1581_v32 = vsel %vm1580_vm9, %v1577_v24, %v1579_v31  ;;  %v1587_v33 = vmul.bf16 %v1579_v31, %v2372_v40  ;;  %v2185_v40 = vld [vmem:[%s2881_s3 + $0x90] sm:$0xff]   ;;  %v2198_v24 = vld [vmem:[%s2881_s3 + $0xe8] sm:$0xff]   ;;  %v2590_v29 = vpop.f32.mrf.mxu1 }
 0x123   : > { %v1586_v34 = vmul.bf16 %v1581_v32, %v2327_v22  ;;  %2018 = vmatmul.mubr.msk.bf16.gmra.mxu0 %vm415_vm1, %v2177_v30  ;;  %v2181_v22 = vld [vmem:[%s2881_s3 + $0x80] sm:$0xff]   ;;  %v2200_v30 = vld [vmem:[%s2881_s3 + $0xf0] sm:$0xff]  }
 0x124   : > { %1624 = vrot.lane.b32.xlu1 %v1587_v33, %s2241_s15  ;;  %2002 = vmatmul.mubr.msk.bf16.gmra.mxu1 %vm415_vm1, %v2178_v21  ;;  %v1160_v53 = vpop.permute.xlu0 %1159  ;;  %v471_v21 = vpop.f32.mrf.mxu0  ;;  %v2201_v32 = vld [vmem:[%s2881_s3 + $0x110] sm:$0xff]  }
 0x125   : > { %1622 = vrot.lane.b32.xlu0 %v1586_v34, %s2241_s15  ;;  %778 = vmatprep.mubr.bf16.mxu0 %v2233_v25  ;;  %v2597_v31 = vpop.f32.mrf.mxu1 }
 0x126   : > { %908 = vmatprep.mubr.bf16.mxu1 %v2233_v25  ;;  %v473_v33 = vpop.f32.mrf.mxu0 }
 0x127   : > { %v2604_v34 = vpop.f32.mrf.mxu1 }
 0x128   : > { %1751 = vperm.xlu1 %2167, %v1737_v44  }
 0x129   : > { %1746 = vperm.xlu0 %2166, %v1736_v43  }
 0x12b   : > { %2019 = vmatmul.mubr.msk.bf16.gmra.mxu0 %vm415_vm1, %v2179_v35  ;;  %v2202_v35 = vld [vmem:[%s2881_s3 + $0xf8] sm:$0xff]  }
 0x12c   : > { %2033 = vmatmul.mubr.msk.bf16.vlgmr.msra.gmra.mxu1 %vm415_vm1, %v2180_v36  ;;  %1054 = vmatprep.mubr.bf16.mxu0 %v2233_v25  ;;  %v475_v36 = vpop.f32.mrf.mxu0 }
 0x12d   : > { %918 = vmatprep.mubr.bf16.mxu1 %v2233_v25  ;;  %1756 = vperm.xlu1 %2167, %v1738_v45  }
 0x12e   : > { %1761 = vperm.xlu0 %2166, %v1739_v46  }
 0x131   : > { %1766 = vperm.xlu1 %2167, %v1740_v47  }
 0x132   : > { %1771 = vperm.xlu0 %2166, %v1741_v48  }
 0x133   : > { %2050 = vmatmul.mubr.msk.bf16.vlgmr.msra.gmra.mxu0 %vm415_vm1, %v2181_v22  ;;  %v2611_v22 = vpop.f32.mrf.mxu1 }
 0x134   : > { %2034 = vmatmul.mubr.msk.bf16.gmra.mxu1 %vm415_vm1, %v2182_v37  ;;  %1064 = vmatprep.mubr.bf16.mxu0 %v2233_v25  ;;  %v2203_v37 = vld [vmem:[%s2881_s3 + $0x118] sm:$0xff]  }
 0x135   : > { %928 = vmatprep.mubr.bf16.mxu1 %v2233_v25  ;;  %1776 = vperm.xlu1 %2167, %v1742_v49  }
 0x136   : > { %1781 = vperm.xlu0 %2166, %v1743_v50  }
 0x13b   : > { %2051 = vmatmul.mubr.msk.bf16.gmra.mxu0 %vm415_vm1, %v2183_v38  ;;  %v479_v38 = vpop.f32.mrf.mxu0 }
 0x13c   : > { %2035 = vmatmul.mubr.msk.bf16.gmra.mxu1 %vm415_vm1, %v2184_v39  ;;  %1074 = vmatprep.mubr.bf16.mxu0 %v2233_v25  ;;  %v2618_v39 = vpop.f32.mrf.mxu1 }
 0x13d   : > { %938 = vmatprep.mubr.bf16.mxu1 %v2233_v25 }
 0x143   : > { %2052 = vmatmul.mubr.msk.bf16.gmra.mxu0 %vm415_vm1, %v2185_v40  ;;  %v481_v40 = vpop.f32.mrf.mxu0 }
 0x144   : > { %2036 = vmatmul.mubr.msk.bf16.gmra.mxu1 %vm415_vm1, %v2186_v41  ;;  %1084 = vmatprep.mubr.bf16.mxu0 %v2233_v25  ;;  %v505_v41 = vpop.f32.mrf.mxu1 }
 0x145   : > { %1214 = vmatprep.mubr.bf16.mxu1 %v2233_v25 }
 0x14b   : > { %2053 = vmatmul.mubr.msk.bf16.gmra.mxu0 %vm415_vm1, %v2187_v42  ;;  %v483_v42 = vpop.f32.mrf.mxu0 }
 0x14c   : > { %1374 = vmatprep.mubr.bf16.mxu0 %v2233_v25 }
 0x14d   : > { %v485_v45 = vpop.f32.mrf.mxu0 }
 0x181   : > { %v1316_v52 = vpop.permute.xlu1 %1315 }
 0x185   : > { %v1158_v54 = vpop.permute.xlu1 %1157 }
 0x186   : > { %v1162_v55 = vsel %vm1161_vm10, %v1156_v51, %v1158_v54  ;;  %v1163_v56 = vsel %vm1161_vm10, %v1158_v54, %v1160_v53 }
 0x187   : > { %v1177_v57 = vsel %vm428_vm0, %v1162_v55, 0  ;;  %2066 = vmatprep.subr.msk.bf16.mxu1 %vm428_vm0, %v1163_v56  ;;  %v1318_v58 = vpop.permute.xlu0 %1317 }
 0x188   : > { %v1322_v60 = vsel %vm1321_vm11, %v1316_v52, %v1318_v58  ;;  %1197 = vmatpush1.bf16.msra.mxu1 %v1177_v57 }
 0x189   : > { %v1320_v61 = vpop.permute.xlu1 %1319  ;;  %v1337_v63 = vsel %vm428_vm0, %v1322_v60, 0 }
 0x18a   : > { %v1323_v62 = vsel %vm1321_vm11, %v1318_v58, %v1320_v61 }
 0x18b   : > { %2067 = vmatmul.mubr.msk.bf16.vlgmr.msra.gmra.mxu1 %vm415_vm1, %v2188_v59  ;;  %2083 = vmatprep.subr.msk.bf16.mxu0 %vm428_vm0, %v1323_v62  ;;  %v1461_v1 = vpop.permute.xlu0 %1460 }
 0x18c   : > { %1357 = vmatpush1.bf16.msra.mxu0 %v1337_v63  ;;  %1224 = vmatprep.mubr.bf16.mxu1 %v2233_v25 }
 0x18d   : > { %v1463_v2 = vpop.permute.xlu1 %1462 }
 0x18e   : > { %v1467_v3 = vsel %vm1466_vm12, %v1461_v1, %v1463_v2 }
 0x18f   : > { %2084 = vmatmul.mubr.msk.bf16.vlgmr.msra.gmra.mxu0 %vm415_vm1, %v2189_v0  ;;  %v1482_v5 = vsel %vm428_vm0, %v1467_v3, 0  ;;  %v1465_v6 = vpop.permute.xlu0 %1464 }
 0x190   : > { %1384 = vmatprep.mubr.bf16.mxu0 %v2233_v25  ;;  %v1468_v7 = vsel %vm1466_vm12, %v1463_v2, %v1465_v6 }
 0x191   : > { %v1621_v8 = vpop.permute.xlu1 %1620  ;;  %2100 = vmatprep.subr.msk.bf16.mxu1 %vm428_vm0, %v1468_v7 }
 0x192   : > { %1502 = vmatpush1.bf16.msra.mxu1 %v1482_v5 }
 0x193   : > { %2068 = vmatmul.mubr.msk.bf16.gmra.mxu1 %vm415_vm1, %v2190_v4 }
 0x194   : > { %1234 = vmatprep.mubr.bf16.mxu1 %v2233_v25 }
 0x196   : > { %v1625_v10 = vpop.permute.xlu1 %1624 }
 0x197   : > { %2085 = vmatmul.mubr.msk.bf16.gmra.mxu0 %vm415_vm1, %v2191_v9  ;;  %v1623_v12 = vpop.permute.xlu0 %1622 }
 0x198   : > { %1394 = vmatprep.mubr.bf16.mxu0 %v2233_v25  ;;  %v1627_v13 = vsel %vm1626_vm13, %v1621_v8, %v1623_v12  ;;  %v1628_v14 = vsel %vm1626_vm13, %v1623_v12, %v1625_v10 }
 0x199   : > { %v1642_v15 = vsel %vm428_vm0, %v1627_v13, 0  ;;  %2117 = vmatprep.subr.msk.bf16.mxu0 %vm428_vm0, %v1628_v14 }
 0x19a   : > { %1662 = vmatpush1.bf16.msra.mxu0 %v1642_v15 }
 0x19b   : > { %2069 = vmatmul.mubr.msk.bf16.gmra.mxu1 %vm415_vm1, %v2192_v11 }
 0x19c   : > { %1244 = vmatprep.mubr.bf16.mxu1 %v2233_v25 }
 0x19f   : > { %2086 = vmatmul.mubr.msk.bf16.gmra.mxu0 %vm415_vm1, %v2193_v16 }
 0x1a0   : > { %1404 = vmatprep.mubr.bf16.mxu0 %v2233_v25 }
 0x1a3   : > { %2070 = vmatmul.mubr.msk.bf16.gmra.mxu1 %vm415_vm1, %v2194_v17 }
 0x1a4   : > { %1519 = vmatprep.mubr.bf16.mxu1 %v2233_v25 }
 0x1a7   : > { %2087 = vmatmul.mubr.msk.bf16.gmra.mxu0 %vm415_vm1, %v2195_v18 }
 0x1a8   : > { %1679 = vmatprep.mubr.bf16.mxu0 %v2233_v25 }
 0x1ab   : > { %2101 = vmatmul.mubr.msk.bf16.vlgmr.msra.gmra.mxu1 %vm415_vm1, %v2196_v19 }
 0x1ac   : > { %1529 = vmatprep.mubr.bf16.mxu1 %v2233_v25 }
 0x1af   : > { %2118 = vmatmul.mubr.msk.bf16.vlgmr.msra.gmra.mxu0 %vm415_vm1, %v2197_v20 }
 0x1b0   : > { %1689 = vmatprep.mubr.bf16.mxu0 %v2233_v25 }
 0x1b3   : > { %2102 = vmatmul.mubr.msk.bf16.gmra.mxu1 %vm415_vm1, %v2198_v24 }
 0x1b4   : > { %1539 = vmatprep.mubr.bf16.mxu1 %v2233_v25 }
 0x1b7   : > { %2119 = vmatmul.mubr.msk.bf16.gmra.mxu0 %vm415_vm1, %v2199_v27 }
 0x1b8   : > { %1699 = vmatprep.mubr.bf16.mxu0 %v2233_v25 }
 0x1bb   : > { %2103 = vmatmul.mubr.msk.bf16.gmra.mxu1 %vm415_vm1, %v2200_v30 }
 0x1bc   : > { %1549 = vmatprep.mubr.bf16.mxu1 %v2233_v25 }
 0x1bf   : > { %2120 = vmatmul.mubr.msk.bf16.gmra.mxu0 %vm415_vm1, %v2201_v32 }
 0x1c0   : > { %1709 = vmatprep.mubr.bf16.mxu0 %v2233_v25 }
 0x1c3   : > { %2104 = vmatmul.mubr.msk.bf16.gmra.mxu1 %vm415_vm1, %v2202_v35 }
 0x1c7   : > { %2121 = vmatmul.mubr.msk.bf16.gmra.mxu0 %vm415_vm1, %v2203_v37 }
 0x1cb   : > { %v592_v43 = vpop.f32.mrf.mxu1 }
 0x1cc   : > { %v593_v47 = vadd.f32 %v592_v43, %v469_v28 }
 0x1cd   : > { %v594_v44 = vpop.f32.mrf.mxu1 }
 0x1ce   : > { %v595_v48 = vadd.f32 %v594_v44, %v471_v21 }
 0x1cf   : > { %v596_v46 = vpop.f32.mrf.mxu1 }
 0x1d0   : > { %v597_v51 = vadd.f32 %v596_v46, %v473_v33 }
 0x1d1   : > { %v598_v25 = vpop.f32.mrf.mxu1 }
 0x1d2   : > { %v599_v55 = vadd.f32 %v598_v25, %v475_v36 }
 0x1d3   : > { %v750_v49 = vpop.f32.mrf.mxu0 }
 0x1d4   : > { %v2621_v50 = vadd.f32 %v750_v49, %v593_v47  ;;  %v602_v52 = vpop.f32.mrf.mxu1 }
 0x1d5   : > { %v752_v53 = vpop.f32.mrf.mxu0  ;;  %v603_v59 = vadd.f32 %v602_v52, %v479_v38 }
 0x1d6   : > { %v2623_v54 = vadd.f32 %v752_v53, %v595_v48  ;;  %v604_v56 = vpop.f32.mrf.mxu1 }
 0x1d7   : > { %v754_v57 = vpop.f32.mrf.mxu0  ;;  %v605_v63 = vadd.f32 %v604_v56, %v481_v40 }
 0x1d8   : > { %v2625_v58 = vadd.f32 %v754_v57, %v597_v51  ;;  %v606_v60 = vpop.f32.mrf.mxu1 }
 0x1d9   : > { %v756_v61 = vpop.f32.mrf.mxu0  ;;  %v607_v4 = vadd.f32 %v606_v60, %v483_v42 }
 0x1da   : > { %v2627_v62 = vadd.f32 %v756_v61, %v599_v55  ;;  %v608_v0 = vpop.f32.mrf.mxu1 }
 0x1db   : > { %v760_v1 = vpop.f32.mrf.mxu0  ;;  %v609_v2 = vadd.f32 %v608_v0, %v485_v45 }
 0x1dc   : > { %v2629_v3 = vadd.f32 %v760_v1, %v603_v59  ;;  %v612_v5 = vpop.f32.mrf.mxu1 }
 0x1dd   : > { %v762_v6 = vpop.f32.mrf.mxu0  ;;  %v613_v11 = vadd.f32 %v612_v5, %v2576_v23 }
 0x1de   : > { %v2631_v7 = vadd.f32 %v762_v6, %v605_v63  ;;  %v614_v8 = vpop.f32.mrf.mxu1 }
 0x1df   : > { %v764_v9 = vpop.f32.mrf.mxu0  ;;  %v615_v15 = vadd.f32 %v614_v8, %v2583_v26 }
 0x1e0   : > { %v2633_v10 = vadd.f32 %v764_v9, %v607_v4  ;;  %v616_v12 = vpop.f32.mrf.mxu1 }
 0x1e1   : > { %v766_v13 = vpop.f32.mrf.mxu0  ;;  %v617_v19 = vadd.f32 %v616_v12, %v2590_v29 }
 0x1e2   : > { %v2636_v14 = vadd.f32 %v766_v13, %v609_v2  ;;  %v618_v16 = vpop.f32.mrf.mxu1 }
 0x1e3   : > { %v770_v17 = vpop.f32.mrf.mxu0  ;;  %v619_v28 = vadd.f32 %v618_v16, %v2597_v31 }
 0x1e4   : > { %v2639_v18 = vadd.f32 %v770_v17, %v613_v11  ;;  %v622_v20 = vpop.f32.mrf.mxu1 }
 0x1e5   : > { %v772_v24 = vpop.f32.mrf.mxu0  ;;  %v623_v32 = vadd.f32 %v622_v20, %v2604_v34 }
 0x1e6   : > { %v2642_v27 = vadd.f32 %v772_v24, %v615_v15  ;;  %v624_v30 = vpop.f32.mrf.mxu1 }
 0x1e7   : > { %v774_v23 = vpop.f32.mrf.mxu0  ;;  %v625_v36 = vadd.f32 %v624_v30, %v2611_v22 }
 0x1e8   : > { %v2645_v21 = vadd.f32 %v774_v23, %v617_v19  ;;  %v626_v33 = vpop.f32.mrf.mxu1 }
 0x1e9   : > { %v776_v26 = vpop.f32.mrf.mxu0  ;;  %v627_v42 = vadd.f32 %v626_v33, %v2618_v39 }
 0x1ea   : > { %v2648_v35 = vadd.f32 %v776_v26, %v619_v28  ;;  %v628_v37 = vpop.f32.mrf.mxu1 }
 0x1eb   : > { %v780_v29 = vpop.f32.mrf.mxu0  ;;  %v629_v38 = vadd.f32 %v628_v37, %v505_v41 }
 0x1ec   : > { %v2651_v40 = vadd.f32 %v780_v29, %v623_v32  ;;  %v910_v47 = vpop.f32.mrf.mxu1 }
 0x1ed   : > { %v782_v31 = vpop.f32.mrf.mxu0 }
 0x1ee   : > { %v2654_v43 = vadd.f32 %v782_v31, %v625_v36  ;;  %v912_v25 = vpop.f32.mrf.mxu1 }
 0x1ef   : > { %v784_v44 = vpop.f32.mrf.mxu0 }
 0x1f0   : > { %v2656_v45 = vadd.f32 %v784_v44, %v627_v42  ;;  %v914_v22 = vpop.f32.mrf.mxu1 }
 0x1f1   : > { %v786_v34 = vpop.f32.mrf.mxu0 }
 0x1f2   : > { %v2658_v46 = vadd.f32 %v786_v34, %v629_v38  ;;  %v916_v41 = vpop.f32.mrf.mxu1 }
 0x1f3   : > { %v2660_v48 = vpop.f32.mrf.mxu0 }
 0x1f4   : > { %v920_v39 = vpop.f32.mrf.mxu1 }
 0x1f5   : > { %v2662_v49 = vpop.f32.mrf.mxu0 }
 0x1f6   : > { %v922_v53 = vpop.f32.mrf.mxu1 }
 0x1f7   : > { %v2664_v51 = vpop.f32.mrf.mxu0 }
 0x1f8   : > { %v924_v56 = vpop.f32.mrf.mxu1 }
 0x1f9   : > { %v2666_v52 = vpop.f32.mrf.mxu0 }
 0x1fa   : > { %v926_v59 = vpop.f32.mrf.mxu1 }
 0x1fb   : > { %v2668_v55 = vpop.f32.mrf.mxu0 }
 0x1fc   : > { %v930_v61 = vpop.f32.mrf.mxu1 }
 0x1fd   : > { %v2670_v57 = vpop.f32.mrf.mxu0 }
 0x1fe   : > { %v2676_v0 = vpop.f32.mrf.mxu1 }
 0x1ff   : > { %v2672_v60 = vpop.f32.mrf.mxu0 }
 0x200   : > { %v2680_v2 = vpop.f32.mrf.mxu1 }
 0x201   : > { %v2674_v63 = vpop.f32.mrf.mxu0 }
 0x202   : > { %v2684_v5 = vpop.f32.mrf.mxu1 }
 0x203   : > { %v2678_v1 = vpop.f32.mrf.mxu0 }
 0x204   : > { %v2688_v8 = vpop.f32.mrf.mxu1 }
 0x205   : > { %v2682_v4 = vpop.f32.mrf.mxu0 }
 0x206   : > { %v2692_v11 = vpop.f32.mrf.mxu1 }
 0x207   : > { %v2686_v6 = vpop.f32.mrf.mxu0 }
 0x208   : > { %v2696_v13 = vpop.f32.mrf.mxu1 }
 0x209   : > { %v2690_v9 = vpop.f32.mrf.mxu0 }
 0x20a   : > { %v2700_v16 = vpop.f32.mrf.mxu1 }
 0x20b   : > { %v2694_v12 = vpop.f32.mrf.mxu0 }
 0x20d   : > { %v2698_v15 = vpop.f32.mrf.mxu0 }
 0x20f   : > { %v2702_v17 = vpop.f32.mrf.mxu0 }
 0x210   : > { %2884 = vst [vmem:[#allocation2_spill] sm:$0xff] %v2702_v17 }
 0x211   : > { %v2704_v20 = vpop.f32.mrf.mxu0 }
 0x212   : > { %2885 = vst [vmem:[#allocation3_spill] sm:$0xff] %v2704_v20 }
 0x24b   : > { %v1216_v19 = vpop.f32.mrf.mxu1 }
 0x24d   : > { %v1218_v24 = vpop.f32.mrf.mxu1 }
 0x24f   : > { %v2706_v28 = vpop.f32.mrf.mxu1  ;;  %v1376_v30 = vpop.f32.mrf.mxu0 }
 0x251   : > { %v2708_v23 = vpop.f32.mrf.mxu1  ;;  %v1378_v32 = vpop.f32.mrf.mxu0 }
 0x253   : > { %v2710_v33 = vpop.f32.mrf.mxu1  ;;  %v2712_v26 = vpop.f32.mrf.mxu0 }
 0x254   : > { %2886 = vst [vmem:[#allocation4_spill] sm:$0xff] %v2710_v33 }
 0x255   : > { %v2714_v36 = vpop.f32.mrf.mxu1  ;;  %v2716_v37 = vpop.f32.mrf.mxu0 }
 0x256   : > { %2887 = vst [vmem:[#allocation5_spill] sm:$0xff] %v2714_v36  ;;  %2888 = vst [vmem:[#allocation6_spill] sm:$0xff] %v2716_v37 }
 0x257   : > { %v2718_v29 = vpop.f32.mrf.mxu1  ;;  %v2720_v38 = vpop.f32.mrf.mxu0 }
 0x258   : > { %2889 = vst [vmem:[#allocation7_spill] sm:$0xff] %v2718_v29  ;;  %2890 = vst [vmem:[#allocation8_spill] sm:$0xff] %v2720_v38 }
 0x259   : > { %v2722_v42 = vpop.f32.mrf.mxu1  ;;  %v2724_v31 = vpop.f32.mrf.mxu0 }
 0x25a   : > { %2891 = vst [vmem:[#allocation9_spill] sm:$0xff] %v2722_v42  ;;  %2892 = vst [vmem:[#allocation10_spill] sm:$0xff] %v2724_v31 }
 0x25b   : > { %v2726_v44 = vpop.f32.mrf.mxu1  ;;  %v2728_v34 = vpop.f32.mrf.mxu0 }
 0x25c   : > { %2893 = vst [vmem:[#allocation11_spill] sm:$0xff] %v2726_v44  ;;  %2894 = vst [vmem:[#allocation12_spill] sm:$0xff] %v2728_v34  ;;  %v949_v44 = vadd.f32 %v910_v47, %v2621_v50  ;;  %v955_v47 = vadd.f32 %v924_v56, %v2633_v10 }
 0x25d   : > { %v2730_v20 = vpop.f32.mrf.mxu1  ;;  %v2732_v33 = vpop.f32.mrf.mxu0 }
 0x25e   : > { %2895 = vst [vmem:[#allocation13_spill] sm:$0xff] %v2730_v20  ;;  %2896 = vst [vmem:[#allocation14_spill] sm:$0xff] %v2732_v33  ;;  %v950_v33 = vadd.f32 %v912_v25, %v2623_v54  ;;  %v1095_v50 = vadd.f32 %v2660_v48, %v949_v44 }
 0x25f   : > { %v2734_v17 = vpop.f32.mrf.mxu1  ;;  %v2736_v36 = vpop.f32.mrf.mxu0 }
 0x260   : > { %2897 = vst [vmem:[#allocation15_spill] sm:$0xff] %v2734_v17  ;;  %2898 = vst [vmem:[#allocation16_spill] sm:$0xff] %v2736_v36  ;;  %v951_v17 = vadd.f32 %v914_v22, %v2625_v58  ;;  %v952_v36 = vadd.f32 %v916_v41, %v2627_v62  ;;  %v1096_v58 = vadd.f32 %v2662_v49, %v950_v33  ;;  %v2906_v33 = vld [vmem:[#allocation3_spill] sm:$0xff] }
 0x261   : > { %v2738_v37 = vpop.f32.mrf.mxu1  ;;  %v2740_v29 = vpop.f32.mrf.mxu0  ;;  %v957_v62 = vadd.f32 %v930_v61, %v2639_v18  ;;  %v1101_v41 = vadd.f32 %v2672_v60, %v955_v47 }
 0x262   : > { %2899 = vst [vmem:[#allocation17_spill] sm:$0xff] %v2738_v37  ;;  %2900 = vst [vmem:[#allocation18_spill] sm:$0xff] %v2740_v29  ;;  %v953_v37 = vadd.f32 %v920_v39, %v2629_v3  ;;  %v954_v29 = vadd.f32 %v922_v53, %v2631_v7  ;;  %v1255_v3 = vadd.f32 %v1216_v19, %v1095_v50 }
 0x263   : > { %v2742_v38 = vpop.f32.mrf.mxu1  ;;  %v2744_v42 = vpop.f32.mrf.mxu0  ;;  %v1097_v7 = vadd.f32 %v2664_v51, %v951_v17  ;;  %v1098_v25 = vadd.f32 %v2666_v52, %v952_v36  ;;  %v958_v39 = vadd.f32 %v2676_v0, %v2642_v27  ;;  %v1256_v49 = vadd.f32 %v1218_v24, %v1096_v58  ;;  %v2904_v24 = vld [vmem:[#allocation2_spill] sm:$0xff] }
 0x264   : > { %2901 = vst [vmem:[#allocation19_spill] sm:$0xff] %v2742_v38  ;;  %v1099_v22 = vadd.f32 %v2668_v55, %v953_v37  ;;  %v1100_v48 = vadd.f32 %v2670_v57, %v954_v29  ;;  %v1415_v53 = vadd.f32 %v1376_v30, %v1255_v3  ;;  %v959_v51 = vadd.f32 %v2680_v2, %v2645_v21 }
 0x265   : > { %v2747_v31 = vpop.f32.mrf.mxu1  ;;  %v2749_v34 = vpop.f32.mrf.mxu0  ;;  %v960_v52 = vadd.f32 %v2684_v5, %v2648_v35  ;;  %v961_v55 = vadd.f32 %v2688_v8, %v2651_v40  ;;  %v1104_v27 = vadd.f32 %v2682_v4, %v958_v39  ;;  %v1416_v60 = vadd.f32 %v1378_v32, %v1256_v49 }
 0x266   : > { %2902 = vst [vmem:[#allocation20_spill] sm:$0xff] %v2747_v31  ;;  %2903 = vst [vmem:[#allocation21_spill] sm:$0xff] %v2749_v34  ;;  %v956_v34 = vadd.f32 %v926_v59, %v2636_v14  ;;  %v1103_v59 = vadd.f32 %v2678_v1, %v957_v62  ;;  %v2790_v0 = vadd.f32 %v2686_v6, %v959_v51  ;;  %v1752_v6 = vpop.permute.xlu1 %1751  ;;  %v2910_v62 = vld [vmem:[#allocation7_spill] sm:$0xff] }
 0x267   : > { %v2756_v20 = vpop.f32.mrf.mxu1  ;;  %v2758_v38 = vpop.f32.mrf.mxu0  ;;  %v962_v21 = vadd.f32 %v2692_v11, %v2654_v43  ;;  %v963_v35 = vadd.f32 %v2696_v13, %v2656_v45  ;;  %v1257_v40 = vadd.f32 %v2706_v28, %v1097_v7  ;;  %v2798_v1 = vadd.f32 %v2690_v9, %v960_v52  ;;  %v2911_v7 = vld [vmem:[#allocation10_spill] sm:$0xff] }
 0x268   : > { %v1102_v18 = vadd.f32 %v2674_v63, %v956_v34  ;;  %v1747_v63 = vpop.permute.xlu0 %1746  ;;  %v964_v4 = vadd.f32 %v2700_v16, %v2658_v46  ;;  %v2804_v19 = vadd.f32 %v2694_v12, %v961_v55  ;;  %v1258_v45 = vadd.f32 %v2708_v23, %v1098_v25  ;;  %v2905_v46 = vld [vmem:[#allocation4_spill] sm:$0xff]  ;;  %v2907_v12 = vld [vmem:[#allocation5_spill] sm:$0xff] }
 0x269   : > { %v2763_v31 = vpop.f32.mrf.mxu1  ;;  %v2765_v54 = vpop.f32.mrf.mxu0  ;;  %v2807_v43 = vadd.f32 %v2698_v15, %v962_v21  ;;  %v1417_v11 = vadd.f32 %v2712_v26, %v1257_v40  ;;  %v2812_v28 = vadd.f32 %v2904_v24, %v963_v35  ;;  %v1259_v16 = vadd.f32 %v2905_v46, %v1099_v22  ;;  %v2908_v15 = vld [vmem:[#allocation6_spill] sm:$0xff]  ;;  %v2909_v26 = vld [vmem:[#allocation8_spill] sm:$0xff]  ;;  %v2912_v55 = vld [vmem:[#allocation9_spill] sm:$0xff] }
 0x26a   : > { %v2816_v36 = vadd.f32 %v2906_v33, %v964_v4  ;;  %v1260_v37 = vadd.f32 %v2907_v12, %v1100_v48  ;;  %v1418_v29 = vadd.f32 %v2908_v15, %v1258_v45  ;;  %v1261_v3 = vadd.f32 %v2910_v62, %v1101_v41  ;;  %v1757_v52 = vpop.permute.xlu1 %1756  ;;  %v2914_v40 = vld [vmem:[#allocation12_spill] sm:$0xff]  ;;  %v2917_v46 = vld [vmem:[#allocation15_spill] sm:$0xff] }
 0x26b   : > { %v2773_v10 = vpop.f32.mrf.mxu0  ;;  %v1521_v14 = vpop.f32.mrf.mxu1  ;;  %v1419_v50 = vadd.f32 %v2909_v26, %v1259_v16  ;;  %v1265_v16 = vadd.f32 %v2917_v46, %v2790_v0 }
 0x26c   : > { %v1560_v61 = vadd.f32 %v1521_v14, %v1415_v53  ;;  %v1420_v25 = vadd.f32 %v2911_v7, %v1260_v37 }
 0x26d   : > { %v2785_v56 = vpop.f32.mrf.mxu0  ;;  %v1523_v57 = vpop.f32.mrf.mxu1 }
 0x26e   : > { %v1561_v8 = vadd.f32 %v1523_v57, %v1416_v60  ;;  %v1262_v57 = vadd.f32 %v2912_v55, %v1102_v18  ;;  %v2913_v60 = vld [vmem:[#allocation11_spill] sm:$0xff] }
 0x26f   : > { %v1525_v2 = vpop.f32.mrf.mxu1  ;;  %v1681_v5 = vpop.f32.mrf.mxu0 }
 0x270   : > { %v1720_v17 = vadd.f32 %v1681_v5, %v1560_v61  ;;  %v1562_v44 = vadd.f32 %v1525_v2, %v1417_v11  ;;  %v1263_v61 = vadd.f32 %v2913_v60, %v1103_v59  ;;  %v1421_v2 = vadd.f32 %v2914_v40, %v1261_v3  ;;  %v2916_v59 = vld [vmem:[#allocation14_spill] sm:$0xff] }
 0x271   : > { %v1527_v13 = vpop.f32.mrf.mxu1  ;;  %v1683_v9 = vpop.f32.mrf.mxu0  ;;  %v1422_v24 = vadd.f32 %v2916_v59, %v1262_v57  ;;  %v1425_v57 = vadd.f32 %v2744_v42, %v1265_v16 }
 0x272   : > { %v1721_v30 = vadd.f32 %v1683_v9, %v1561_v8  ;;  %v1784_v32 = vadd.f32 %v1747_v63, %v1720_v17  ;;  %v1563_v22 = vadd.f32 %v1527_v13, %v1418_v29  ;;  %v2915_v17 = vld [vmem:[#allocation13_spill] sm:$0xff]  ;;  %v2918_v29 = vld [vmem:[#allocation16_spill] sm:$0xff] }
 0x273   : > { %v1531_v23 = vpop.f32.mrf.mxu1  ;;  %v1685_v34 = vpop.f32.mrf.mxu0  ;;  %v1264_v45 = vadd.f32 %v2915_v17, %v1104_v27 }
 0x274   : > { %v1785_v47 = vadd.f32 %v1747_v63, %v1721_v30  ;;  %vm1800_vm14 = vcmp.ge.f32.partialorder %v1784_v32, 0.0  ;;  %v1816_v58 = vmul.f32 0.1, %v1784_v32  ;;  %v1722_v48 = vadd.f32 %v1685_v34, %v1562_v44  ;;  %v2919_v34 = vld [vmem:[#allocation18_spill] sm:$0xff] }
 0x275   : > { %v1533_v14 = vpop.f32.mrf.mxu1  ;;  %v1687_v39 = vpop.f32.mrf.mxu0  ;;  %v1564_v51 = vadd.f32 %v1531_v23, %v1419_v50  ;;  %v1423_v44 = vadd.f32 %v2918_v29, %v1263_v61  ;;  %v1424_v26 = vadd.f32 %v2919_v34, %v1264_v45 }
 0x276   : > { %vm1801_vm15 = vcmp.ge.f32.partialorder %v1785_v47, 0.0  ;;  %v1817_v49 = vmul.f32 0.1, %v1785_v47  ;;  %v1832_v53 = vsel %vm1800_vm14, %v1784_v32, %v1816_v58  ;;  %v1786_v63 = vadd.f32 %v1752_v6, %v1722_v48  ;;  %v2920_v48 = vld [vmem:[#allocation17_spill] sm:$0xff] }
 0x277   : > { %1848 = vst [vmem:[%s2823_s29] sm:$0xff] %v1832_v53  ;;  %v1723_v21 = vadd.f32 %v1687_v39, %v1563_v22  ;;  %v1535_v41 = vpop.f32.mrf.mxu1  ;;  %v1691_v35 = vpop.f32.mrf.mxu0  ;;  %v1565_v4 = vadd.f32 %v1533_v14, %v1420_v25  ;;  %v1266_v14 = vadd.f32 %v2920_v48, %v2798_v1  ;;  %v2921_v39 = vld [vmem:[#allocation19_spill] sm:$0xff] }
 0x278   : > { %v1833_v5 = vsel %vm1801_vm15, %v1785_v47, %v1817_v49  ;;  %v1724_v8 = vadd.f32 %v1691_v35, %v1564_v51  ;;  %vm1802_vm0 = vcmp.ge.f32.partialorder %v1786_v63, 0.0  ;;  %v1818_v11 = vmul.f32 0.1, %v1786_v63  ;;  %v1762_v22 = vpop.permute.xlu0 %1761 }
 0x279   : > { %1849 = vst [vmem:[%s2823_s29 + $0x8] sm:$0xff] %v1833_v5  ;;  %v1787_v13 = vadd.f32 %v1752_v6, %v1723_v21  ;;  %v1537_v18 = vpop.f32.mrf.mxu1  ;;  %v1693_v9 = vpop.f32.mrf.mxu0  ;;  %v1566_v37 = vadd.f32 %v1535_v41, %v1421_v2  ;;  %v1267_v49 = vadd.f32 %v2921_v39, %v2804_v19  ;;  %v2922_v41 = vld [vmem:[#allocation20_spill] sm:$0xff]  ;;  %v2923_v5 = vld [vmem:[#allocation21_spill] sm:$0xff] }
 0x27a   : > { %v1788_v30 = vadd.f32 %v1757_v52, %v1724_v8  ;;  %v1725_v32 = vadd.f32 %v1693_v9, %v1565_v4  ;;  %v1834_v33 = vsel %vm1802_vm0, %v1786_v63, %v1818_v11  ;;  %v1567_v0 = vadd.f32 %v1537_v18, %v1422_v24  ;;  %v1767_v21 = vpop.permute.xlu1 %1766 }
 0x27b   : > { %vm1803_vm1 = vcmp.ge.f32.partialorder %v1787_v13, 0.0  ;;  %v1819_v12 = vmul.f32 0.1, %v1787_v13  ;;  %v1541_v27 = vpop.f32.mrf.mxu1  ;;  %v1695_v15 = vpop.f32.mrf.mxu0  ;;  %1850 = vst [vmem:[%s2823_s29 + $0x10] sm:$0xff] %v1834_v33  ;;  %v1268_v35 = vadd.f32 %v2922_v41, %v2807_v43  ;;  %v1426_v4 = vadd.f32 %v2923_v5, %v1266_v14 }
 0x27c   : > { %vm1804_vm2 = vcmp.ge.f32.partialorder %v1788_v30, 0.0  ;;  %v1820_v6 = vmul.f32 0.1, %v1788_v30  ;;  %v1789_v23 = vadd.f32 %v1757_v52, %v1725_v32  ;;  %v1726_v47 = vadd.f32 %v1695_v15, %v1566_v37 }
 0x27d   : > { %v1835_v50 = vsel %vm1803_vm1, %v1787_v13, %v1819_v12  ;;  %v1543_v58 = vpop.f32.mrf.mxu1  ;;  %v1697_v62 = vpop.f32.mrf.mxu0  ;;  %v1568_v25 = vadd.f32 %v1541_v27, %v1423_v44  ;;  %v1269_v8 = vadd.f32 %v2756_v20, %v2812_v28  ;;  %v1427_v9 = vadd.f32 %v2758_v38, %v1267_v49 }
 0x27e   : > { %1851 = vst [vmem:[%s2823_s29 + $0x18] sm:$0xff] %v1835_v50  ;;  %v1836_v3 = vsel %vm1804_vm2, %v1788_v30, %v1820_v6  ;;  %vm1805_vm3 = vcmp.ge.f32.partialorder %v1789_v23, 0.0  ;;  %v1821_v7 = vmul.f32 0.1, %v1789_v23  ;;  %v1727_v53 = vadd.f32 %v1697_v62, %v1567_v0  ;;  %v1772_v27 = vpop.permute.xlu0 %1771  ;;  %v1777_v50 = vpop.permute.xlu1 %1776 }
 0x27f   : > { %1852 = vst [vmem:[%s2823_s29 + $0x20] sm:$0xff] %v1836_v3  ;;  %v1790_v51 = vadd.f32 %v1762_v22, %v1726_v47  ;;  %v1545_v52 = vpop.f32.mrf.mxu1  ;;  %v1701_v55 = vpop.f32.mrf.mxu0  ;;  %v1569_v61 = vadd.f32 %v1543_v58, %v1424_v26  ;;  %v1428_v46 = vadd.f32 %v2765_v54, %v1268_v35  ;;  %v1270_v38 = vadd.f32 %v2763_v31, %v2816_v36 }
 0x280   : > { %v1837_v60 = vsel %vm1805_vm3, %v1789_v23, %v1821_v7  ;;  %v1728_v63 = vadd.f32 %v1701_v55, %v1568_v25  ;;  %v1791_v40 = vadd.f32 %v1762_v22, %v1727_v53  ;;  %v1570_v13 = vadd.f32 %v1545_v52, %v1425_v57 }
 0x281   : > { %1853 = vst [vmem:[%s2823_s29 + $0x28] sm:$0xff] %v1837_v60  ;;  %vm1806_vm4 = vcmp.ge.f32.partialorder %v1790_v51, 0.0  ;;  %v1822_v1 = vmul.f32 0.1, %v1790_v51  ;;  %v1547_v19 = vpop.f32.mrf.mxu1  ;;  %v1703_v2 = vpop.f32.mrf.mxu0  ;;  %v1429_v6 = vadd.f32 %v2773_v10, %v1269_v8  ;;  %v1430_v0 = vadd.f32 %v2785_v56, %v1270_v38 }
 0x282   : > { %v1792_v42 = vadd.f32 %v1767_v21, %v1728_v63  ;;  %v1729_v17 = vadd.f32 %v1703_v2, %v1569_v61  ;;  %vm1807_vm5 = vcmp.ge.f32.partialorder %v1791_v40, 0.0  ;;  %v1823_v45 = vmul.f32 0.1, %v1791_v40  ;;  %v1782_v57 = vpop.permute.xlu0 %1781 }
 0x283   : > { %v1838_v11 = vsel %vm1806_vm4, %v1790_v51, %v1822_v1  ;;  %v1551_v43 = vpop.f32.mrf.mxu1  ;;  %v1705_v18 = vpop.f32.mrf.mxu0  ;;  %v1571_v20 = vadd.f32 %v1547_v19, %v1426_v4 }
 0x284   : > { %1854 = vst [vmem:[%s2823_s29 + $0x30] sm:$0xff] %v1838_v11  ;;  %vm1808_vm6 = vcmp.ge.f32.partialorder %v1792_v42, 0.0  ;;  %v1824_v59 = vmul.f32 0.1, %v1792_v42  ;;  %v1793_v24 = vadd.f32 %v1767_v21, %v1729_v17  ;;  %v1839_v16 = vsel %vm1807_vm5, %v1791_v40, %v1823_v45 }
 0x285   : > { %v1730_v28 = vadd.f32 %v1705_v18, %v1570_v13  ;;  %v1553_v30 = vpop.f32.mrf.mxu1  ;;  %v1707_v32 = vpop.f32.mrf.mxu0  ;;  %1855 = vst [vmem:[%s2823_s29 + $0x38] sm:$0xff] %v1839_v16  ;;  %v1572_v37 = vadd.f32 %v1551_v43, %v1427_v9 }
 0x286   : > { %v1840_v33 = vsel %vm1808_vm6, %v1792_v42, %v1824_v59  ;;  %vm1809_vm7 = vcmp.ge.f32.partialorder %v1793_v24, 0.0  ;;  %v1825_v12 = vmul.f32 0.1, %v1793_v24  ;;  %v1731_v15 = vadd.f32 %v1707_v32, %v1571_v20 }
 0x287   : > { %1856 = vst [vmem:[%s2823_s29 + $0x40] sm:$0xff] %v1840_v33  ;;  %v1794_v29 = vadd.f32 %v1772_v27, %v1730_v28  ;;  %v1555_v44 = vpop.f32.mrf.mxu1  ;;  %v1711_v54 = vpop.f32.mrf.mxu0  ;;  %v1573_v34 = vadd.f32 %v1553_v30, %v1428_v46 }
 0x288   : > { %v1841_v23 = vsel %vm1809_vm7, %v1793_v24, %v1825_v12  ;;  %v1732_v26 = vadd.f32 %v1711_v54, %v1572_v37  ;;  %v1795_v47 = vadd.f32 %v1772_v27, %v1731_v15  ;;  %v1574_v36 = vadd.f32 %v1555_v44, %v1429_v6 }
 0x289   : > { %1857 = vst [vmem:[%s2823_s29 + $0x48] sm:$0xff] %v1841_v23  ;;  %vm1810_vm8 = vcmp.ge.f32.partialorder %v1794_v29, 0.0  ;;  %v1826_v58 = vmul.f32 0.1, %v1794_v29  ;;  %v1557_v62 = vpop.f32.mrf.mxu1  ;;  %v1713_v31 = vpop.f32.mrf.mxu0 }
 0x28a   : > { %v1796_v3 = vadd.f32 %v1777_v50, %v1732_v26  ;;  %v1733_v7 = vadd.f32 %v1713_v31, %v1573_v34  ;;  %vm1811_vm9 = vcmp.ge.f32.partialorder %v1795_v47, 0.0  ;;  %v1827_v25 = vmul.f32 0.1, %v1795_v47 }
 0x28b   : > { %v1842_v10 = vsel %vm1810_vm8, %v1794_v29, %v1826_v58  ;;  %v1575_v22 = vadd.f32 %v1557_v62, %v1430_v0  ;;  %v1715_v48 = vpop.f32.mrf.mxu0 }
 0x28c   : > { %1858 = vst [vmem:[%s2823_s29 + $0x50] sm:$0xff] %v1842_v10  ;;  %vm1812_vm10 = vcmp.ge.f32.partialorder %v1796_v3, 0.0  ;;  %v1828_v56 = vmul.f32 0.1, %v1796_v3  ;;  %v1797_v14 = vadd.f32 %v1777_v50, %v1733_v7  ;;  %v1734_v39 = vadd.f32 %v1715_v48, %v1574_v36 }
 0x28d   : > { %v1843_v49 = vsel %vm1811_vm9, %v1795_v47, %v1827_v25  ;;  %v1717_v53 = vpop.f32.mrf.mxu0 }
 0x28e   : > { %1859 = vst [vmem:[%s2823_s29 + $0x58] sm:$0xff] %v1843_v49  ;;  %v1844_v51 = vsel %vm1812_vm10, %v1796_v3, %v1828_v56  ;;  %vm1813_vm11 = vcmp.ge.f32.partialorder %v1797_v14, 0.0  ;;  %v1829_v52 = vmul.f32 0.1, %v1797_v14  ;;  %v1735_v55 = vadd.f32 %v1717_v53, %v1575_v22 }
 0x28f   : > { %1860 = vst [vmem:[%s2823_s29 + $0x60] sm:$0xff] %v1844_v51  ;;  %v1798_v60 = vadd.f32 %v1782_v57, %v1734_v39 }
 0x290   : > { %v1845_v61 = vsel %vm1813_vm11, %v1797_v14, %v1829_v52  ;;  %v1799_v63 = vadd.f32 %v1782_v57, %v1735_v55 }
 0x291   : > { %1861 = vst [vmem:[%s2823_s29 + $0x68] sm:$0xff] %v1845_v61  ;;  %vm1814_vm12 = vcmp.ge.f32.partialorder %v1798_v60, 0.0  ;;  %v1830_v21 = vmul.f32 0.1, %v1798_v60 }
 0x292   : > { %vm1815_vm13 = vcmp.ge.f32.partialorder %v1799_v63, 0.0  ;;  %v1831_v41 = vmul.f32 0.1, %v1799_v63 }
 0x293   : > { %v1846_v35 = vsel %vm1814_vm12, %v1798_v60, %v1830_v21 }
 0x294   : > { %v1847_v40 = vsel %vm1815_vm13, %v1799_v63, %v1831_v41  ;;  %1862 = vst [vmem:[%s2823_s29 + $0x70] sm:$0xff] %v1846_v35 }
 0x295   : > { %1863 = vst [vmem:[%s2823_s29 + $0x78] sm:$0xff] %v1847_v40 }
 0x296 PF: > { %s15_s20 = sadd.s32 1, %s2226_s20   ;;  %s2924_s18 = smov %s2222_s19 }
 0x297   : > { %p12_p5 = scmp.ge.s32.totalorder %s15_s20, 4   ;;  %s2925_s19 = smov %s2927_s21 }
 0x299   :  { %14 = sbr.rel (!%p12_p5) target bundleno = 2 (0x2), region = 81 }

</bundles_post_ra>
